<compile_context>
chip_gen: v7x
topology: tpu7x:2x2x1
jax: 0.10.0
libtpu: 0.0.40
codegen_flags: <defaults>
</compile_context>

<pallas_src>
import jax
import jax.numpy as jnp
from jax.experimental import pallas as pl
from jax.experimental.pallas import tpu as pltpu

NEG_SLOPE = 0.01   # torch.nn.functional.leaky_relu default
LANE = 128
SUBLANE = 8


def _round_up(n, m):
    return ((n + m - 1) // m) * m


def _mlp_kernel(x_ref,
                w1_ref, b1_ref,
                w2_ref, b2_ref,
                w3_ref, b3_ref,
                w4_ref, b4_ref,
                w5_ref, b5_ref,
                out_ref):
    # MXU input dtype follows the (bf16 by default) weights; accumulation is
    # f32 (preferred_element_type); bias add + activation stay f32.  Bias adds
    # broadcast implicitly ([1, N] against [block_b, N]).
    mxu_dt = w1_ref.dtype

    def layer(h, w_ref, b_ref):
        return jnp.dot(h.astype(mxu_dt), w_ref[...],
                       preferred_element_type=jnp.float32) + b_ref[...]

    h = layer(x_ref[...], w1_ref, b1_ref)
    h = jnp.maximum(h, NEG_SLOPE * h)          # leaky_relu: 2 VALU ops
    h = layer(h, w2_ref, b2_ref)
    h = jnp.maximum(h, NEG_SLOPE * h)
    h = layer(h, w3_ref, b3_ref)
    h = jnp.maximum(h, NEG_SLOPE * h)
    h = layer(h, w4_ref, b4_ref)
    h = jnp.maximum(h, NEG_SLOPE * h)
    y = layer(h, w5_ref, b5_ref)

    out_ref[...] = y.astype(out_ref.dtype)


def prepare_params(params, *, weight_dtype=jnp.bfloat16):
    """One-time parameter preparation (hoisted out of the per-call wrapper).

    params: dict w1..w5 stored as [in, out] (i.e. torch W.T), b1..b5 as
            [1, out], any float dtype.
    * Weights cast to `weight_dtype` (bf16 default = native MXU input dtype,
      half the resident/HBM bytes); biases kept f32.
    * w5 / b5 zero-padded on the output lane axis (num_actions -> 128) so the
      kernel store is lane-dense; the padding is sliced off in the wrapper.
    """
    f32 = jnp.float32
    hidden = params["w1"].shape[1]
    num_actions = params["w5"].shape[1]
    dout_p = _round_up(num_actions, LANE)

    w5_p = (jnp.zeros((hidden, dout_p), weight_dtype)
            .at[:, :num_actions].set(params["w5"].astype(weight_dtype)))
    b5_p = (jnp.zeros((1, dout_p), f32)
            .at[:, :num_actions].set(params["b5"].astype(f32)))

    weights = (
        params["w1"].astype(weight_dtype), params["b1"].astype(f32),
        params["w2"].astype(weight_dtype), params["b2"].astype(f32),
        params["w3"].astype(weight_dtype), params["b3"].astype(f32),
        params["w4"].astype(weight_dtype), params["b4"].astype(f32),
        w5_p, b5_p,
    )
    return {"weights": weights, "num_actions": num_actions}


def connectx_network2(x, prepared, *, out_dtype=jnp.float32,
                      max_block_b=2048):
    """Forward pass.  x: [B, num_states] float; returns [B, num_actions]."""
    weights = prepared["weights"]
    num_actions = prepared["num_actions"]
    num_states, hidden = weights[0].shape
    dout_p = weights[8].shape[1]

    B = x.shape[0]
    assert x.shape[1] == num_states

    # Padding-aware batch tiling: big tiles amortize the ~0.35 us/step pipeline
    # overhead; >=2 tiles for B >= 256 lets the "parallel" axis shard across
    # v7x's two TensorCores.  Batch waste is < SUBLANE rows per tile.
    n_tiles = pl.cdiv(B, max_block_b)
    if B >= 256:
        n_tiles = max(n_tiles, 2)
    block_b = _round_up(pl.cdiv(B, n_tiles), SUBLANE)
    bp = block_b * n_tiles

    x = x.astype(jnp.float32)
    if bp != B:
        x_in = jnp.zeros((bp, num_states), jnp.float32).at[:B, :].set(x)
    else:
        x_in = x

    # x streams unpadded on the lane axis (full-dim last block is legal even
    # though num_states=42 is not a multiple of 128); the dtype cast happens
    # in-kernel so no extra wrapper pass is needed.
    x_spec = pl.BlockSpec((block_b, num_states), lambda i: (i, 0))
    out_spec = pl.BlockSpec((block_b, dout_p), lambda i: (i, 0))
    # Whole-array, constant-index blocks: DMA'd once, VMEM-resident across all
    # grid steps.  (Explicit list; no late-binding closure issue since the
    # lambdas capture nothing.)
    resident_specs = [pl.BlockSpec(w.shape, lambda i: (0, 0)) for w in weights]

    out_itemsize = jnp.dtype(out_dtype).itemsize
    flops = 2 * bp * (num_states * hidden + 3 * hidden * hidden
                      + hidden * dout_p)
    bytes_accessed = (sum(int(w.size) * w.dtype.itemsize for w in weights)
                      + bp * num_states * 4 + bp * dout_p * out_itemsize)
    cost = pl.CostEstimate(flops=flops, transcendentals=0,
                           bytes_accessed=bytes_accessed)

    out_p = pl.pallas_call(
        _mlp_kernel,
        out_shape=jax.ShapeDtypeStruct((bp, dout_p), out_dtype),
        grid=(n_tiles,),
        in_specs=[x_spec] + resident_specs,
        out_specs=out_spec,
        compiler_params=pltpu.CompilerParams(
            dimension_semantics=("parallel",)),
        cost_estimate=cost,
    )(x_in, *weights)

    # TODO(synk): the [:B, :num_actions] slice re-reads the padded slab; could
    # be fused by the consumer if this ever shows up in profiles.
    return out_p[:B, :num_actions]


def init_params(num_states, num_actions, key):
    """Deterministic synthetic init (PyTorch-like uniform fan-in scaling)."""
    sizes = [(num_states, 128), (128, 128), (128, 128), (128, 128),
             (128, num_actions)]
    params = {}
    for i, (fan_in, fan_out) in enumerate(sizes, start=1):
        key, kw, kb = jax.random.split(key, 3)
        bound = 1.0 / jnp.sqrt(jnp.float32(fan_in))
        # Stored as [in, out] == W.T relative to torch's [out, in].
        params[f"w{i}"] = jax.random.uniform(
            kw, (fan_in, fan_out), jnp.float32, -bound, bound)
        params[f"b{i}"] = jax.random.uniform(
            kb, (1, fan_out), jnp.float32, -bound, bound)
    return params


def reference_forward(x, params):
    h = x
    for i in range(1, 5):
        h = h @ params[f"w{i}"].astype(jnp.float32) + params[f"b{i}"]
        h = jnp.where(h > 0, h, NEG_SLOPE * h)
    return h @ params["w5"].astype(jnp.float32) + params["b5"]


if __name__ == "__main__":
    # ConnectX: 6x7 board -> num_states=42, num_actions=7 columns.
    num_states, num_actions = 42, 7

    key = jax.random.PRNGKey(0)
    key, kx, kx2 = jax.random.split(key, 3)
    params = init_params(num_states, num_actions, key)

    # 1) f32-weight variant, small batch (single 8-row tile) -> tight check of
    #    kernel math against the pure-JAX reference.
    prep_f32 = prepare_params(params, weight_dtype=jnp.float32)
    x_small = jax.random.normal(kx, (8, num_states), jnp.float32)
    out_small = jax.block_until_ready(connectx_network2(x_small, prep_f32))
    ref_small = reference_forward(x_small, params)
    assert out_small.shape == (8, num_actions)
    assert jnp.allclose(out_small, ref_small, atol=1e-4, rtol=1e-4), \
        "f32 small-batch mismatch vs reference"

    # 2) Default bf16 weights, multi-tile batch: B=300 -> 2 tiles of 152 rows
    #    (exercises batch padding to 304, weight residency across grid steps,
    #    and the >=2-tile megacore split).
    prep_bf16 = prepare_params(params)
    x_big = jax.random.normal(kx2, (300, num_states), jnp.float32)
    out_big = jax.block_until_ready(connectx_network2(x_big, prep_bf16))
    ref_big = reference_forward(x_big, params)
    assert out_big.shape == (300, num_actions)
    assert jnp.allclose(out_big, ref_big, atol=1e-1, rtol=1e-1), \
        "bf16 multi-tile mismatch vs reference"

    # 3) bf16 output path (lane-dense stores, half the write bytes).
    out_bf16 = jax.block_until_ready(
        connectx_network2(x_big, prep_bf16, out_dtype=jnp.bfloat16))
    assert out_bf16.dtype == jnp.bfloat16
    assert jnp.allclose(out_bf16.astype(jnp.float32), ref_big,
                        atol=1e-1, rtol=1e-1), "bf16-output mismatch"

    print("KERNEL_OK")
</pallas_src>

<mosaic_0001>
module attributes {stable_mosaic.version = 11 : i64} {
  func.func @_mlp_kernel(%arg0: i32, %arg1: memref<8x42xf32, #tpu.memory_space<vmem>>, %arg2: memref<42x128xf32, #tpu.memory_space<vmem>>, %arg3: memref<1x128xf32, #tpu.memory_space<vmem>>, %arg4: memref<128x128xf32, #tpu.memory_space<vmem>>, %arg5: memref<1x128xf32, #tpu.memory_space<vmem>>, %arg6: memref<128x128xf32, #tpu.memory_space<vmem>>, %arg7: memref<1x128xf32, #tpu.memory_space<vmem>>, %arg8: memref<128x128xf32, #tpu.memory_space<vmem>>, %arg9: memref<1x128xf32, #tpu.memory_space<vmem>>, %arg10: memref<128x128xf32, #tpu.memory_space<vmem>>, %arg11: memref<1x128xf32, #tpu.memory_space<vmem>>, %arg12: memref<8x128xf32, #tpu.memory_space<vmem>>) attributes {dimension_semantics = [#tpu.dimension_semantics<parallel>], iteration_bounds = array<i64: 1>, scalar_prefetch = 0 : i64, scratch_operands = 0 : i64, tpu.core_type = #tpu.core_type<tc>, window_params = [{transform_indices = @transform_0, window_bounds = array<i64: 8, 42>}, {pipeline_mode = #tpu.pipeline_mode<synchronous>, transform_indices = @transform_1, window_bounds = array<i64: 42, 128>}, {pipeline_mode = #tpu.pipeline_mode<synchronous>, transform_indices = @transform_2, window_bounds = array<i64: 1, 128>}, {pipeline_mode = #tpu.pipeline_mode<synchronous>, transform_indices = @transform_3, window_bounds = array<i64: 128, 128>}, {pipeline_mode = #tpu.pipeline_mode<synchronous>, transform_indices = @transform_4, window_bounds = array<i64: 1, 128>}, {pipeline_mode = #tpu.pipeline_mode<synchronous>, transform_indices = @transform_5, window_bounds = array<i64: 128, 128>}, {pipeline_mode = #tpu.pipeline_mode<synchronous>, transform_indices = @transform_6, window_bounds = array<i64: 1, 128>}, {pipeline_mode = #tpu.pipeline_mode<synchronous>, transform_indices = @transform_7, window_bounds = array<i64: 128, 128>}, {pipeline_mode = #tpu.pipeline_mode<synchronous>, transform_indices = @transform_8, window_bounds = array<i64: 1, 128>}, {pipeline_mode = #tpu.pipeline_mode<synchronous>, transform_indices = @transform_9, window_bounds = array<i64: 128, 128>}, {pipeline_mode = #tpu.pipeline_mode<synchronous>, transform_indices = @transform_10, window_bounds = array<i64: 1, 128>}, {transform_indices = @transform_11, window_bounds = array<i64: 8, 128>}]} {
    %c0 = arith.constant 0 : index
    %c0_0 = arith.constant 0 : index
    %0 = vector.load %arg1[%c0, %c0_0] : memref<8x42xf32, #tpu.memory_space<vmem>>, vector<8x42xf32>
    %c0_1 = arith.constant 0 : index
    %c0_2 = arith.constant 0 : index
    %1 = vector.load %arg2[%c0_1, %c0_2] : memref<42x128xf32, #tpu.memory_space<vmem>>, vector<42x128xf32>
    %cst = arith.constant dense<0.000000e+00> : vector<8x128xf32>
    %2 = tpu.matmul %0, %1, %cst {dimension_numbers = #tpu.dot_dimension_numbers<[1], [0], [0], [1], [0, 0, 1, 1], [], []>} : vector<8x42xf32>, vector<42x128xf32>, vector<8x128xf32> -> vector<8x128xf32>
    %c0_3 = arith.constant 0 : index
    %c0_4 = arith.constant 0 : index
    %3 = vector.load %arg3[%c0_3, %c0_4] : memref<1x128xf32, #tpu.memory_space<vmem>>, vector<1x128xf32>
    %4 = vector.broadcast %3 : vector<1x128xf32> to vector<8x128xf32>
    %5 = arith.addf %2, %4 : vector<8x128xf32>
    %cst_5 = arith.constant 0.00999999977 : f32
    %6 = vector.broadcast %cst_5 : f32 to vector<8x128xf32>
    %7 = arith.mulf %6, %5 : vector<8x128xf32>
    %8 = arith.maximumf %5, %7 : vector<8x128xf32>
    %c0_6 = arith.constant 0 : index
    %c0_7 = arith.constant 0 : index
    %9 = vector.load %arg4[%c0_6, %c0_7] : memref<128x128xf32, #tpu.memory_space<vmem>>, vector<128x128xf32>
    %cst_8 = arith.constant dense<0.000000e+00> : vector<8x128xf32>
    %10 = tpu.matmul %8, %9, %cst_8 {dimension_numbers = #tpu.dot_dimension_numbers<[1], [0], [0], [1], [0, 0, 1, 1], [], []>} : vector<8x128xf32>, vector<128x128xf32>, vector<8x128xf32> -> vector<8x128xf32>
    %c0_9 = arith.constant 0 : index
    %c0_10 = arith.constant 0 : index
    %11 = vector.load %arg5[%c0_9, %c0_10] : memref<1x128xf32, #tpu.memory_space<vmem>>, vector<1x128xf32>
    %12 = vector.broadcast %11 : vector<1x128xf32> to vector<8x128xf32>
    %13 = arith.addf %10, %12 : vector<8x128xf32>
    %cst_11 = arith.constant 0.00999999977 : f32
    %14 = vector.broadcast %cst_11 : f32 to vector<8x128xf32>
    %15 = arith.mulf %14, %13 : vector<8x128xf32>
    %16 = arith.maximumf %13, %15 : vector<8x128xf32>
    %c0_12 = arith.constant 0 : index
    %c0_13 = arith.constant 0 : index
    %17 = vector.load %arg6[%c0_12, %c0_13] : memref<128x128xf32, #tpu.memory_space<vmem>>, vector<128x128xf32>
    %cst_14 = arith.constant dense<0.000000e+00> : vector<8x128xf32>
    %18 = tpu.matmul %16, %17, %cst_14 {dimension_numbers = #tpu.dot_dimension_numbers<[1], [0], [0], [1], [0, 0, 1, 1], [], []>} : vector<8x128xf32>, vector<128x128xf32>, vector<8x128xf32> -> vector<8x128xf32>
    %c0_15 = arith.constant 0 : index
    %c0_16 = arith.constant 0 : index
    %19 = vector.load %arg7[%c0_15, %c0_16] : memref<1x128xf32, #tpu.memory_space<vmem>>, vector<1x128xf32>
    %20 = vector.broadcast %19 : vector<1x128xf32> to vector<8x128xf32>
    %21 = arith.addf %18, %20 : vector<8x128xf32>
    %cst_17 = arith.constant 0.00999999977 : f32
    %22 = vector.broadcast %cst_17 : f32 to vector<8x128xf32>
    %23 = arith.mulf %22, %21 : vector<8x128xf32>
    %24 = arith.maximumf %21, %23 : vector<8x128xf32>
    %c0_18 = arith.constant 0 : index
    %c0_19 = arith.constant 0 : index
    %25 = vector.load %arg8[%c0_18, %c0_19] : memref<128x128xf32, #tpu.memory_space<vmem>>, vector<128x128xf32>
    %cst_20 = arith.constant dense<0.000000e+00> : vector<8x128xf32>
    %26 = tpu.matmul %24, %25, %cst_20 {dimension_numbers = #tpu.dot_dimension_numbers<[1], [0], [0], [1], [0, 0, 1, 1], [], []>} : vector<8x128xf32>, vector<128x128xf32>, vector<8x128xf32> -> vector<8x128xf32>
    %c0_21 = arith.constant 0 : index
    %c0_22 = arith.constant 0 : index
    %27 = vector.load %arg9[%c0_21, %c0_22] : memref<1x128xf32, #tpu.memory_space<vmem>>, vector<1x128xf32>
    %28 = vector.broadcast %27 : vector<1x128xf32> to vector<8x128xf32>
    %29 = arith.addf %26, %28 : vector<8x128xf32>
    %cst_23 = arith.constant 0.00999999977 : f32
    %30 = vector.broadcast %cst_23 : f32 to vector<8x128xf32>
    %31 = arith.mulf %30, %29 : vector<8x128xf32>
    %32 = arith.maximumf %29, %31 : vector<8x128xf32>
    %c0_24 = arith.constant 0 : index
    %c0_25 = arith.constant 0 : index
    %33 = vector.load %arg10[%c0_24, %c0_25] : memref<128x128xf32, #tpu.memory_space<vmem>>, vector<128x128xf32>
    %cst_26 = arith.constant dense<0.000000e+00> : vector<8x128xf32>
    %34 = tpu.matmul %32, %33, %cst_26 {dimension_numbers = #tpu.dot_dimension_numbers<[1], [0], [0], [1], [0, 0, 1, 1], [], []>} : vector<8x128xf32>, vector<128x128xf32>, vector<8x128xf32> -> vector<8x128xf32>
    %c0_27 = arith.constant 0 : index
    %c0_28 = arith.constant 0 : index
    %35 = vector.load %arg11[%c0_27, %c0_28] : memref<1x128xf32, #tpu.memory_space<vmem>>, vector<1x128xf32>
    %36 = vector.broadcast %35 : vector<1x128xf32> to vector<8x128xf32>
    %37 = arith.addf %34, %36 : vector<8x128xf32>
    %c0_29 = arith.constant 0 : index
    %c0_30 = arith.constant 0 : index
    %38 = vector.load %arg12[%c0_29, %c0_30] : memref<8x128xf32, #tpu.memory_space<vmem>>, vector<8x128xf32>
    tpu.vector_store %arg12[%c0_29, %c0_30], %37 {strides = array<i32>} : memref<8x128xf32, #tpu.memory_space<vmem>>, vector<8x128xf32>,
    return
  }
  func.func @transform_0(%arg0: i32) -> (i32, i32) {
    %c0_i32 = arith.constant 0 : i32
    %c0_i32_0 = arith.constant 0 : i32
    return %arg0, %c0_i32 : i32, i32
  }
  func.func @transform_1(%arg0: i32) -> (i32, i32) {
    %c0_i32 = arith.constant 0 : i32
    %c0_i32_0 = arith.constant 0 : i32
    %c0_i32_1 = arith.constant 0 : i32
    return %c0_i32, %c0_i32_0 : i32, i32
  }
  func.func @transform_2(%arg0: i32) -> (i32, i32) {
    %c0_i32 = arith.constant 0 : i32
    %c0_i32_0 = arith.constant 0 : i32
    %c0_i32_1 = arith.constant 0 : i32
    return %c0_i32, %c0_i32_0 : i32, i32
  }
  func.func @transform_3(%arg0: i32) -> (i32, i32) {
    %c0_i32 = arith.constant 0 : i32
    %c0_i32_0 = arith.constant 0 : i32
    %c0_i32_1 = arith.constant 0 : i32
    return %c0_i32, %c0_i32_0 : i32, i32
  }
  func.func @transform_4(%arg0: i32) -> (i32, i32) {
    %c0_i32 = arith.constant 0 : i32
    %c0_i32_0 = arith.constant 0 : i32
    %c0_i32_1 = arith.constant 0 : i32
    return %c0_i32, %c0_i32_0 : i32, i32
  }
  func.func @transform_5(%arg0: i32) -> (i32, i32) {
    %c0_i32 = arith.constant 0 : i32
    %c0_i32_0 = arith.constant 0 : i32
    %c0_i32_1 = arith.constant 0 : i32
    return %c0_i32, %c0_i32_0 : i32, i32
  }
  func.func @transform_6(%arg0: i32) -> (i32, i32) {
    %c0_i32 = arith.constant 0 : i32
    %c0_i32_0 = arith.constant 0 : i32
    %c0_i32_1 = arith.constant 0 : i32
    return %c0_i32, %c0_i32_0 : i32, i32
  }
  func.func @transform_7(%arg0: i32) -> (i32, i32) {
    %c0_i32 = arith.constant 0 : i32
    %c0_i32_0 = arith.constant 0 : i32
    %c0_i32_1 = arith.constant 0 : i32
    return %c0_i32, %c0_i32_0 : i32, i32
  }
  func.func @transform_8(%arg0: i32) -> (i32, i32) {
    %c0_i32 = arith.constant 0 : i32
    %c0_i32_0 = arith.constant 0 : i32
    %c0_i32_1 = arith.constant 0 : i32
    return %c0_i32, %c0_i32_0 : i32, i32
  }
  func.func @transform_9(%arg0: i32) -> (i32, i32) {
    %c0_i32 = arith.constant 0 : i32
    %c0_i32_0 = arith.constant 0 : i32
    %c0_i32_1 = arith.constant 0 : i32
    return %c0_i32, %c0_i32_0 : i32, i32
  }
  func.func @transform_10(%arg0: i32) -> (i32, i32) {
    %c0_i32 = arith.constant 0 : i32
    %c0_i32_0 = arith.constant 0 : i32
    %c0_i32_1 = arith.constant 0 : i32
    return %c0_i32, %c0_i32_0 : i32, i32
  }
  func.func @transform_11(%arg0: i32) -> (i32, i32) {
    %c0_i32 = arith.constant 0 : i32
    %c0_i32_0 = arith.constant 0 : i32
    return %arg0, %c0_i32 : i32, i32
  }
}

</mosaic_0001>

<bundles_post_ra>
// kernel: tpu_custom_call.1
= control target key start
LH: loop header
LB: loop body
LE: loop exit
PB: predicated region body
PF: predicated region fallthrough
CT: control target
= control target key end

     0   :  { %16 = vsyncpa [#allocation3], 0  ;;  %s1362_s0 = inlined_call_operand.hbm [shape: f32[8,42], index: 0, kind: input, shape index: {}]   ;;  %s1363_s1 = inlined_call_operand.hbm [shape: f32[42,128], index: 1, kind: input, shape index: {}]   ;;  %s1364_s2 = inlined_call_operand.vmem [shape: f32[1,128], index: 2, kind: input, shape index: {}]   ;;  %s1365_s3 = inlined_call_operand.hbm [shape: f32[128,128], index: 3, kind: input, shape index: {}]   ;;  %s1366_s4 = inlined_call_operand.vmem [shape: f32[1,128], index: 4, kind: input, shape index: {}]   ;;  %s1367_s5 = inlined_call_operand.hbm [shape: f32[128,128], index: 5, kind: input, shape index: {}]   ;;  %s1368_s6 = inlined_call_operand.vmem [shape: f32[1,128], index: 6, kind: input, shape index: {}]   ;;  %s1369_s7 = inlined_call_operand.hbm [shape: f32[128,128], index: 7, kind: input, shape index: {}]   ;;  %s1370_s8 = inlined_call_operand.vmem [shape: f32[1,128], index: 8, kind: input, shape index: {}]   ;;  %s1371_s9 = inlined_call_operand.hbm [shape: f32[128,128], index: 9, kind: input, shape index: {}]   ;;  %s1372_s10 = inlined_call_operand.vmem [shape: f32[1,128], index: 10, kind: input, shape index: {}]   ;;  %s1373_s11 = inlined_call_operand.hbm [shape: f32[8,128], index: 11, kind: output, shape index: {}]  }
   0x1   :  { %17 = vsyncpa [#allocation6], 0 }
   0x2   :  { %18 = vsyncpa [#allocation9], 0 }
   0x3   :  { %19 = vsyncpa [#allocation12], 0 }
   0x4   :  { %20 = vsyncpa [#allocation4], 0  ;;  %s1130_s17 = smov [#allocation5]   ;;  %s966_s21 = scalar_lea.hbm %s1363_s1, 768 }
   0x5   :  { %s36_s18 = sshll.u32 %s1130_s17, 4  ;;  %p967_p0 = scmp.ne.s32.totalorder %s1363_s1, %s966_s21  ;;  %s37_s18 = int_to_ptr.vmem [resolvable:$true] %s36_s18 }
   0x6   :  { %p970_p1 = scmp.lt.u32.totalorder %s966_s21, %s1363_s1 }
   0x8   :  { %p972_p2 = pnand %p970_p1, %p967_p0 }
   0xa   :  { %975 = shalt.err (!%p972_p2)
}
   0xb   :  { %s976_s26 = scalar_lea.vmem %s37_s18, 768  ;;  %p981_p4 = scmp.lt.s32.totalorder %s37_s18, %s37_s18 }
   0xc   :  { %p977_p3 = scmp.ne.s32.totalorder %s37_s18, %s976_s26  ;;  %p982_p5 = scmp.lt.s32.totalorder %s976_s26, %s976_s26 }
   0xe   :  { %p983_p6 = por %p982_p5, %p981_p4 }
  0x10   :  { %p984_p7 = pnand %p983_p6, %p977_p3 }
  0x12   :  { %987 = shalt.err (!%p984_p7)
}
  0x13   :  { %s1131_s27 = smov 128   ;;  %s1132_s28 = smov 8  }
  0x14   :  { %42 = dma.hbm_to_vmem [thread:$0]  %s1363_s1, 768, %s37_s18, [#allocation6], %s1131_s27, %s1131_s27, %s1132_s28  }
  0x15   :  { %s1133_s12 = smov [#allocation8]   ;;  %s1134_s14 = smov [#allocation2]  }
  0x16   :  { %s64_s13 = sshll.u32 %s1133_s12, 4  ;;  %s27_s15 = sshll.u32 %s1134_s14, 4  ;;  %s65_s13 = int_to_ptr.vmem [resolvable:$true] %s64_s13  ;;  %s28_s15 = int_to_ptr.vmem [resolvable:$true] %s27_s15 }
  0x17   :  { %s988_s19 = scalar_lea.hbm %s1367_s5, 2048 }
  0x18   :  { %p989_p8 = scmp.ne.s32.totalorder %s1367_s5, %s988_s19  ;;  %p992_p9 = scmp.lt.u32.totalorder %s988_s19, %s1367_s5 }
  0x1a   :  { %p994_p10 = pnand %p992_p9, %p989_p8 }
  0x1c   :  { %997 = shalt.err (!%p994_p10)
}
  0x1d   :  { %s998_s1 = scalar_lea.vmem %s65_s13, 2048  ;;  %p1003_p12 = scmp.lt.s32.totalorder %s65_s13, %s65_s13 }
  0x1e   :  { %p999_p11 = scmp.ne.s32.totalorder %s65_s13, %s998_s1  ;;  %p1004_p13 = scmp.lt.s32.totalorder %s998_s1, %s998_s1 }
  0x20   :  { %p1005_p0 = por %p1004_p13, %p1003_p12 }
  0x22   :  { %p1006_p1 = pnand %p1005_p0, %p999_p11 }
  0x24   :  { %1009 = shalt.err (!%p1006_p1)
}
  0x25   :  { %70 = dma.hbm_to_vmem [thread:$0]  %s1367_s5, 2048, %s65_s13, [#allocation9], %s1131_s27, %s1131_s27, %s1132_s28  }
  0x26   :  { %s1010_s29 = scalar_lea.hbm %s1362_s0, 128 }
  0x27   :  { %p1011_p2 = scmp.ne.s32.totalorder %s1362_s0, %s1010_s29  ;;  %p1014_p3 = scmp.lt.u32.totalorder %s1010_s29, %s1362_s0 }
  0x29   :  { %p1016_p4 = pnand %p1014_p3, %p1011_p2 }
  0x2b   :  { %1019 = shalt.err (!%p1016_p4)
}
  0x2c   :  { %s1020_s17 = scalar_lea.vmem %s28_s15, 128  ;;  %p1025_p6 = scmp.lt.s32.totalorder %s28_s15, %s28_s15 }
  0x2d   :  { %p1021_p5 = scmp.ne.s32.totalorder %s28_s15, %s1020_s17  ;;  %p1026_p7 = scmp.lt.s32.totalorder %s1020_s17, %s1020_s17 }
  0x2f   :  { %p1027_p8 = por %p1026_p7, %p1025_p6 }
  0x31   :  { %p1028_p9 = pnand %p1027_p8, %p1021_p5 }
  0x33   :  { %1031 = shalt.err (!%p1028_p9)
}
  0x34   :  { %30 = dma.hbm_to_vmem [thread:$0]  %s1362_s0, 128, %s28_s15, [#allocation3]  }
  0x35   :  { %s1135_s19 = smov [#allocation7]   ;;  %s1136_s21 = smov [#allocation10]  }
  0x36   :  { %s50_s20 = sshll.u32 %s1135_s19, 4  ;;  %s78_s22 = sshll.u32 %s1136_s21, 4  ;;  %s51_s20 = int_to_ptr.vmem [resolvable:$true] %s50_s20  ;;  %s79_s22 = int_to_ptr.vmem [resolvable:$true] %s78_s22 }
  0x37   :  { %s1032_s18 = scalar_lea.hbm %s1365_s3, 2048 }
  0x38   :  { %p1033_p10 = scmp.ne.s32.totalorder %s1365_s3, %s1032_s18  ;;  %p1036_p11 = scmp.lt.u32.totalorder %s1032_s18, %s1365_s3 }
  0x3a   :  { %p1038_p12 = pnand %p1036_p11, %p1033_p10 }
  0x3c   :  { %1041 = shalt.err (!%p1038_p12)
}
  0x3d   :  { %s1042_s0 = scalar_lea.vmem %s51_s20, 2048  ;;  %p1047_p0 = scmp.lt.s32.totalorder %s51_s20, %s51_s20 }
  0x3e   :  { %p1043_p13 = scmp.ne.s32.totalorder %s51_s20, %s1042_s0  ;;  %p1048_p1 = scmp.lt.s32.totalorder %s1042_s0, %s1042_s0 }
  0x40   :  { %p1049_p2 = por %p1048_p1, %p1047_p0 }
  0x42   :  { %p1050_p3 = pnand %p1049_p2, %p1043_p13 }
  0x44   :  { %1053 = shalt.err (!%p1050_p3)
}
  0x45   :  { %56 = dma.hbm_to_vmem [thread:$0]  %s1365_s3, 2048, %s51_s20, [#allocation6], %s1131_s27, %s1131_s27, %s1132_s28  }
  0x46   :  { %s1054_s16 = scalar_lea.hbm %s1369_s7, 2048 }
  0x47   :  { %p1055_p4 = scmp.ne.s32.totalorder %s1369_s7, %s1054_s16  ;;  %p1058_p5 = scmp.lt.u32.totalorder %s1054_s16, %s1369_s7 }
  0x49   :  { %p1060_p6 = pnand %p1058_p5, %p1055_p4 }
  0x4b   :  { %1063 = shalt.err (!%p1060_p6)
}
  0x4c   :  { %s1064_s21 = scalar_lea.vmem %s79_s22, 2048  ;;  %p1069_p8 = scmp.lt.s32.totalorder %s79_s22, %s79_s22 }
  0x4d   :  { %p1065_p7 = scmp.ne.s32.totalorder %s79_s22, %s1064_s21  ;;  %p1070_p9 = scmp.lt.s32.totalorder %s1064_s21, %s1064_s21 }
  0x4f   :  { %p1071_p10 = por %p1070_p9, %p1069_p8 }
  0x51   :  { %p1072_p11 = pnand %p1071_p10, %p1065_p7 }
  0x53   :  { %1075 = shalt.err (!%p1072_p11)
}
  0x54   :  { %84 = dma.hbm_to_vmem [thread:$0]  %s1369_s7, 2048, %s79_s22, [#allocation9], %s1131_s27, %s1131_s27, %s1132_s28  }
  0x55   :  { %s1137_s23 = smov [#allocation11]   ;;  %s1076_s25 = scalar_lea.hbm %s1371_s9, 2048 }
  0x56   :  { %s92_s1 = sshll.u32 %s1137_s23, 4  ;;  %p1077_p12 = scmp.ne.s32.totalorder %s1371_s9, %s1076_s25  ;;  %s93_s1 = int_to_ptr.vmem [resolvable:$true] %s92_s1 }
  0x57   :  { %p1080_p13 = scmp.lt.u32.totalorder %s1076_s25, %s1371_s9 }
  0x59   :  { %p1082_p0 = pnand %p1080_p13, %p1077_p12 }
  0x5b   :  { %1085 = shalt.err (!%p1082_p0)
}
  0x5c   :  { %s1086_s30 = scalar_lea.vmem %s93_s1, 2048  ;;  %p1091_p2 = scmp.lt.s32.totalorder %s93_s1, %s93_s1 }
  0x5d   :  { %p1087_p1 = scmp.ne.s32.totalorder %s93_s1, %s1086_s30  ;;  %p1092_p3 = scmp.lt.s32.totalorder %s1086_s30, %s1086_s30 }
  0x5f   :  { %p1093_p4 = por %p1092_p3, %p1091_p2 }
  0x61   :  { %p1094_p5 = pnand %p1093_p4, %p1087_p1 }
  0x63   :  { %1097 = shalt.err (!%p1094_p5)
}
  0x64   :  { %98 = dma.hbm_to_vmem [thread:$0]  %s1371_s9, 2048, %s93_s1, [#allocation12], %s1131_s27, %s1131_s27, %s1132_s28  }
  0x65   :  { %1120 = dma.done.wait [#allocation3], 128  }
  0x66   :  { %1121 = vsyncadd [#allocation3], 4294967168 }
  0x67   :  { %1122 = dma.done.wait [#allocation6], 2816  }
  0x68   :  { %1123 = vsyncadd [#allocation6], 4294964480 }
  0x69   :  { %1124 = dma.done.wait [#allocation9], 4096  }
  0x6a   :  { %1125 = vsyncadd [#allocation9], 4294963200 }
  0x6b   :  { %1126 = dma.done.wait [#allocation12], 2048  }
  0x6c   :  { %1127 = vsyncadd [#allocation12], 4294965248  ;;  %v1138_v0 = vmov 0.0|0.0   ;;  %vm1139_vm0 = vmmov 0   ;;  %v1140_v1 = vmov 0.0   ;;  %v120_v2 = vld [vmem:[#allocation5] sm:$0xff] }
  0x6d   :  { %847 = vmatprep.subr.bf16.mxu0 %v1138_v0  ;;  %857 = vmatprep.subr.bf16.mxu1 %v1138_v0  ;;  %v121_v3 = vld [vmem:[#allocation5 + $0x8] sm:$0xff]  ;;  %v122_v4 = vld [vmem:[#allocation5 + $0x10] sm:$0xff]  ;;  %v123_v6 = vld [vmem:[#allocation5 + $0x18] sm:$0xff]  ;;  %vm137_vm1 = vcmask 1041408   ;;  %vm1141_vm2 = vmmov 1   ;;  %vm133_vm4 = vcmask 343040  }
  0x6e   :  { %704 = vmatprep.mubr.msk.f32.mxu0 %vm1139_vm0, %v1140_v1  ;;  %739 = vmatprep.mubr.msk.f32.mxu1 %vm1139_vm0, %v1140_v1  ;;  %v848_v5 = vpack.c.bf16 %v121_v3, %v120_v2  ;;  %v213_v7 = vld [vmem:[#allocation7] sm:$0xff]  ;;  %v214_v8 = vld [vmem:[#allocation7 + $0x8] sm:$0xff]  ;;  %v851_v9 = vpack.c.bf16 %v123_v6, %v122_v4  ;;  %v215_v11 = vld [vmem:[#allocation7 + $0x10] sm:$0xff]  ;;  %s1142_s5 = smov [#allocation13]  }
  0x6f   :  { %v858_v10 = vpack.c.bf16 %v214_v8, %v213_v7  ;;  %v216_v12 = vld [vmem:[#allocation7 + $0x18] sm:$0xff]  ;;  %v124_v13 = vld [vmem:[#allocation5 + $0x20] sm:$0xff]  ;;  %v217_v16 = vld [vmem:[#allocation7 + $0x20] sm:$0xff]  ;;  %s598_s13 = sshll.u32 %s1142_s5, 4  ;;  %s599_s13 = int_to_ptr.vmem [resolvable:$true] %s598_s13 }
  0x70   :  { %849 = vmatpush3.bf16.msra.mxu0 %v848_v5  ;;  %v125_v14 = vld [vmem:[#allocation5 + $0x28] sm:$0x3]  ;;  %v861_v15 = vpack.c.bf16 %v216_v12, %v215_v11  ;;  %v218_v17 = vld [vmem:[#allocation7 + $0x28] sm:$0xff]  ;;  %vm855_vm3 = vmpackc.low %vm137_vm1, %vm1141_vm2  ;;  %s1098_s19 = scalar_lea.vmem %s599_s13, 128  ;;  %p1103_p7 = scmp.lt.s32.totalorder %s599_s13, %s599_s13 }
  0x71   :  { %850 = vmatprep.subr.bf16.mxu0 %v1138_v0  ;;  %859 = vmatpush3.bf16.msra.mxu1 %v858_v10  ;;  %v854_v18 = vpack.c.bf16 %v125_v14, %v124_v13  ;;  %v864_v19 = vpack.c.bf16 %v218_v17, %v217_v16  ;;  %v219_v20 = vld [vmem:[#allocation7 + $0x30] sm:$0xff]  ;;  %v220_v21 = vld [vmem:[#allocation7 + $0x38] sm:$0xff]  ;;  %v119_v22 = vld [vmem:[#allocation2] sm:$0xff]  ;;  %p1099_p6 = scmp.ne.s32.totalorder %s599_s13, %s1098_s19  ;;  %p1104_p8 = scmp.lt.s32.totalorder %s1098_s19, %s1098_s19 }
  0x72   :  { %860 = vmatprep.subr.bf16.mxu1 %v1138_v0  ;;  %v867_v23 = vpack.c.bf16 %v220_v21, %v219_v20  ;;  %v221_v24 = vld [vmem:[#allocation7 + $0x40] sm:$0xff]  ;;  %v222_v25 = vld [vmem:[#allocation7 + $0x48] sm:$0xff]  ;;  %v223_v27 = vld [vmem:[#allocation7 + $0x50] sm:$0xff] }
  0x73   :  { %v870_v26 = vpack.c.bf16 %v222_v25, %v221_v24  ;;  %v224_v28 = vld [vmem:[#allocation7 + $0x58] sm:$0xff]  ;;  %v225_v30 = vld [vmem:[#allocation7 + $0x60] sm:$0xff]  ;;  %v226_v31 = vld [vmem:[#allocation7 + $0x68] sm:$0xff]  ;;  %p1105_p9 = por %p1104_p8, %p1103_p7 }
  0x74   :  { %852 = vmatpush3.bf16.msra.mxu0 %v851_v9  ;;  %v873_v29 = vpack.c.bf16 %v224_v28, %v223_v27  ;;  %v876_v32 = vpack.c.bf16 %v226_v31, %v225_v30  ;;  %v227_v33 = vld [vmem:[#allocation7 + $0x70] sm:$0xff]  ;;  %v228_v34 = vld [vmem:[#allocation7 + $0x78] sm:$0xff]  ;;  %v308_v36 = vld [vmem:[#allocation8] sm:$0xff] }
  0x75   :  { %853 = vmatprep.subr.bf16.mxu0 %v1138_v0  ;;  %862 = vmatpush3.bf16.msra.mxu1 %v861_v15  ;;  %v879_v35 = vpack.c.bf16 %v228_v34, %v227_v33  ;;  %v309_v37 = vld [vmem:[#allocation8 + $0x8] sm:$0xff]  ;;  %v310_v38 = vld [vmem:[#allocation8 + $0x10] sm:$0xff]  ;;  %v311_v40 = vld [vmem:[#allocation8 + $0x18] sm:$0xff]  ;;  %p1106_p10 = pnand %p1105_p9, %p1099_p6 }
  0x76   :  { %863 = vmatprep.subr.bf16.mxu1 %v1138_v0  ;;  %v882_v39 = vpack.c.bf16 %v309_v37, %v308_v36  ;;  %v885_v41 = vpack.c.bf16 %v311_v40, %v310_v38  ;;  %v312_v42 = vld [vmem:[#allocation8 + $0x20] sm:$0xff]  ;;  %v313_v43 = vld [vmem:[#allocation8 + $0x28] sm:$0xff]  ;;  %v314_v45 = vld [vmem:[#allocation8 + $0x30] sm:$0xff] }
  0x77   :  { %v888_v44 = vpack.c.bf16 %v313_v43, %v312_v42  ;;  %v315_v46 = vld [vmem:[#allocation8 + $0x38] sm:$0xff]  ;;  %v316_v48 = vld [vmem:[#allocation8 + $0x40] sm:$0xff]  ;;  %v317_v49 = vld [vmem:[#allocation8 + $0x48] sm:$0xff] }
  0x78   :  { %856 = vmatpush3.bf16.msk.msra.mxu0 %vm855_vm3, %v854_v18  ;;  %v891_v47 = vpack.c.bf16 %v315_v46, %v314_v45  ;;  %v894_v50 = vpack.c.bf16 %v317_v49, %v316_v48  ;;  %v318_v51 = vld [vmem:[#allocation8 + $0x50] sm:$0xff]  ;;  %v319_v52 = vld [vmem:[#allocation8 + $0x58] sm:$0xff]  ;;  %v610_v54 = vld [vmem:[%s1364_s2] ss:$0 sm:$0xff] }
  0x79   :  { %881 = vmatprep.subr.bf16.mxu0 %v1138_v0  ;;  %865 = vmatpush3.bf16.msra.mxu1 %v864_v19  ;;  %v897_v53 = vpack.c.bf16 %v319_v52, %v318_v51  ;;  %v320_v60 = vld [vmem:[#allocation8 + $0x60] sm:$0xff]  ;;  %v321_v61 = vld [vmem:[#allocation8 + $0x68] sm:$0xff]  ;;  %v322_v63 = vld [vmem:[#allocation8 + $0x70] sm:$0xff] }
  0x7a   :  { %866 = vmatprep.subr.bf16.mxu1 %v1138_v0  ;;  %v900_v62 = vpack.c.bf16 %v321_v61, %v320_v60  ;;  %v323_v2 = vld [vmem:[#allocation8 + $0x78] sm:$0xff]  ;;  %v403_v4 = vld [vmem:[#allocation10] sm:$0xff]  ;;  %v404_v5 = vld [vmem:[#allocation10 + $0x8] sm:$0xff] }
  0x7b   :  { %705 = vmatmul.mubr.msk.f32.vlgmr.msra.gmra.mrb[0].mxu0 %vm133_vm4, %v119_v22  ;;  %v903_v3 = vpack.c.bf16 %v323_v2, %v322_v63  ;;  %v405_v6 = vld [vmem:[#allocation10 + $0x10] sm:$0xff]  ;;  %v906_v7 = vpack.c.bf16 %v404_v5, %v403_v4  ;;  %v406_v8 = vld [vmem:[#allocation10 + $0x18] sm:$0xff]  ;;  %v407_v10 = vld [vmem:[#allocation10 + $0x20] sm:$0xff] }
  0x7c   :  { %774 = vmatprep.mubr.msk.f32.mxu0 %vm1139_vm0, %v1140_v1  ;;  %883 = vmatpush3.bf16.msra.mxu0 %v882_v39  ;;  %v909_v9 = vpack.c.bf16 %v406_v8, %v405_v6  ;;  %v408_v11 = vld [vmem:[#allocation10 + $0x28] sm:$0xff]  ;;  %v409_v13 = vld [vmem:[#allocation10 + $0x30] sm:$0xff]  ;;  %v410_v14 = vld [vmem:[#allocation10 + $0x38] sm:$0xff] }
  0x7d   :  { %868 = vmatpush3.bf16.msra.mxu1 %v867_v23  ;;  %884 = vmatprep.subr.bf16.mxu0 %v1138_v0  ;;  %v912_v12 = vpack.c.bf16 %v408_v11, %v407_v10  ;;  %v915_v15 = vpack.c.bf16 %v410_v14, %v409_v13  ;;  %v411_v16 = vld [vmem:[#allocation10 + $0x40] sm:$0xff]  ;;  %v412_v17 = vld [vmem:[#allocation10 + $0x48] sm:$0xff]  ;;  %v413_v19 = vld [vmem:[#allocation10 + $0x50] sm:$0xff] }
  0x7e   :  { %869 = vmatprep.subr.bf16.mxu1 %v1138_v0  ;;  %v918_v18 = vpack.c.bf16 %v412_v17, %v411_v16  ;;  %v414_v20 = vld [vmem:[#allocation10 + $0x58] sm:$0xff]  ;;  %v613_v22 = vld [vmem:[%s1366_s4] ss:$0 sm:$0xff]  ;;  %v415_v28 = vld [vmem:[#allocation10 + $0x60] sm:$0xff] }
  0x7f   :  { %v921_v21 = vpack.c.bf16 %v414_v20, %v413_v19  ;;  %v417_v31 = vld [vmem:[#allocation10 + $0x70] sm:$0xff]  ;;  %v498_v34 = vld [vmem:[#allocation11] sm:$0xff]  ;;  %v501_v38 = vld [vmem:[#allocation11 + $0x18] sm:$0xff] }
  0x80   :  { %886 = vmatpush3.bf16.msra.mxu0 %v885_v41  ;;  %v500_v36 = vld [vmem:[#allocation11 + $0x10] sm:$0xff]  ;;  %v503_v40 = vld [vmem:[#allocation11 + $0x28] sm:$0xff]  ;;  %v505_v43 = vld [vmem:[#allocation11 + $0x38] sm:$0xff] }
  0x81   :  { %871 = vmatpush3.bf16.msra.mxu1 %v870_v26  ;;  %887 = vmatprep.subr.bf16.mxu0 %v1138_v0  ;;  %v933_v39 = vpack.c.bf16 %v501_v38, %v500_v36  ;;  %v504_v42 = vld [vmem:[#allocation11 + $0x30] sm:$0xff]  ;;  %v506_v45 = vld [vmem:[#allocation11 + $0x40] sm:$0xff]  ;;  %v507_v46 = vld [vmem:[#allocation11 + $0x48] sm:$0xff] }
  0x82   :  { %872 = vmatprep.subr.bf16.mxu1 %v1138_v0  ;;  %v508_v48 = vld [vmem:[#allocation11 + $0x50] sm:$0xff]  ;;  %v509_v49 = vld [vmem:[#allocation11 + $0x58] sm:$0xff]  ;;  %v614_v51 = vld [vmem:[%s1368_s6] ss:$0 sm:$0xff] }
  0x83   :  { %v512_v60 = vld [vmem:[#allocation11 + $0x70] sm:$0xff]  ;;  %v513_v61 = vld [vmem:[#allocation11 + $0x78] sm:$0xff]  ;;  %v615_v63 = vld [vmem:[%s1370_s8] ss:$0 sm:$0xff] }
  0x84   :  { %889 = vmatpush3.bf16.msra.mxu0 %v888_v44  ;;  %v939_v44 = vpack.c.bf16 %v505_v43, %v504_v42 }
  0x85   :  { %874 = vmatpush3.bf16.msra.mxu1 %v873_v29  ;;  %890 = vmatprep.subr.bf16.mxu0 %v1138_v0  ;;  %v416_v29 = vld [vmem:[#allocation10 + $0x68] sm:$0xff] }
  0x86   :  { %875 = vmatprep.subr.bf16.mxu1 %v1138_v0  ;;  %v924_v30 = vpack.c.bf16 %v416_v29, %v415_v28 }
  0x88   :  { %892 = vmatpush3.bf16.msra.mxu0 %v891_v47  ;;  %v942_v47 = vpack.c.bf16 %v507_v46, %v506_v45 }
  0x89   :  { %877 = vmatpush3.bf16.msra.mxu1 %v876_v32  ;;  %893 = vmatprep.subr.bf16.mxu0 %v1138_v0  ;;  %v418_v32 = vld [vmem:[#allocation10 + $0x78] sm:$0xff] }
  0x8a   :  { %878 = vmatprep.subr.bf16.mxu1 %v1138_v0  ;;  %v927_v33 = vpack.c.bf16 %v418_v32, %v417_v31 }
  0x8c   :  { %895 = vmatpush3.bf16.msra.mxu0 %v894_v50  ;;  %v945_v50 = vpack.c.bf16 %v509_v49, %v508_v48 }
  0x8d   :  { %880 = vmatpush3.bf16.msra.mxu1 %v879_v35  ;;  %896 = vmatprep.subr.bf16.mxu0 %v1138_v0  ;;  %v499_v35 = vld [vmem:[#allocation11 + $0x8] sm:$0xff] }
  0x8e   :  { %905 = vmatprep.subr.bf16.mxu1 %v1138_v0  ;;  %v930_v37 = vpack.c.bf16 %v499_v35, %v498_v34 }
  0x90   :  { %898 = vmatpush3.bf16.msra.mxu0 %v897_v53 }
  0x91   :  { %899 = vmatprep.subr.bf16.mxu0 %v1138_v0 }
  0x94   :  { %901 = vmatpush3.bf16.msra.mxu0 %v900_v62  ;;  %v951_v62 = vpack.c.bf16 %v513_v61, %v512_v60 }
  0x95   :  { %902 = vmatprep.subr.bf16.mxu0 %v1138_v0 }
  0x98   :  { %904 = vmatpush3.bf16.msra.mxu0 %v903_v3 }
  0x99   :  { %929 = vmatprep.subr.bf16.mxu0 %v1138_v0 }
 0x14e   :  { %v207_v55 = vpop.f32.mrb[0].mxu0 }
 0x14f   :  { %v208_v56 = vadd.f32 %v610_v54, %v207_v55  ;;  %v706_v57 = vpop.f32.mrb[1].mxu0 }
 0x150   :  { %v510_v57 = vld [vmem:[#allocation11 + $0x60] sm:$0xff] }
 0x151   :  { %v211_v58 = vmul.f32 0.01, %v208_v56 }
 0x153   :  { %v212_v59 = vmax.f32 %v208_v56, %v211_v58  ;;  %v511_v58 = vld [vmem:[#allocation11 + $0x68] sm:$0xff] }
 0x155   :  { %740 = vmatmul.mubr.f32.vlgmr.msra.gmra.mrb[0].mxu1 %v212_v59  ;;  %v948_v59 = vpack.c.bf16 %v511_v58, %v510_v57 }
 0x156   :  { %809 = vmatprep.mubr.msk.f32.mxu1 %vm1139_vm0, %v1140_v1  ;;  %907 = vmatpush3.bf16.msra.mxu1 %v906_v7  ;;  %v616_v7 = vld [vmem:[%s1372_s10] ss:$0 sm:$0xff] }
 0x157   :  { %908 = vmatprep.subr.bf16.mxu1 %v1138_v0 }
 0x15a   :  { %910 = vmatpush3.bf16.msra.mxu1 %v909_v9 }
 0x15b   :  { %911 = vmatprep.subr.bf16.mxu1 %v1138_v0 }
 0x15e   :  { %913 = vmatpush3.bf16.msra.mxu1 %v912_v12 }
 0x15f   :  { %914 = vmatprep.subr.bf16.mxu1 %v1138_v0 }
 0x162   :  { %916 = vmatpush3.bf16.msra.mxu1 %v915_v15 }
 0x163   :  { %917 = vmatprep.subr.bf16.mxu1 %v1138_v0 }
 0x166   :  { %919 = vmatpush3.bf16.msra.mxu1 %v918_v18 }
 0x167   :  { %920 = vmatprep.subr.bf16.mxu1 %v1138_v0 }
 0x16a   :  { %922 = vmatpush3.bf16.msra.mxu1 %v921_v21 }
 0x16b   :  { %923 = vmatprep.subr.bf16.mxu1 %v1138_v0 }
 0x16e   :  { %925 = vmatpush3.bf16.msra.mxu1 %v924_v30 }
 0x16f   :  { %926 = vmatprep.subr.bf16.mxu1 %v1138_v0 }
 0x172   :  { %928 = vmatpush3.bf16.msra.mxu1 %v927_v33 }
 0x228   :  { %v302_v23 = vpop.f32.mrb[0].mxu1 }
 0x229   :  { %v303_v24 = vadd.f32 %v613_v22, %v302_v23  ;;  %v741_v25 = vpop.f32.mrb[1].mxu1 }
 0x22b   :  { %v306_v26 = vmul.f32 0.01, %v303_v24 }
 0x22d   :  { %v307_v27 = vmax.f32 %v303_v24, %v306_v26 }
 0x22f   :  { %775 = vmatmul.mubr.f32.vlgmr.msra.gmra.mrb[2].mxu0 %v307_v27 }
 0x230   :  { %844 = vmatprep.mubr.msk.f32.mxu0 %vm1139_vm0, %v1140_v1  ;;  %931 = vmatpush3.bf16.msra.mxu0 %v930_v37  ;;  %v502_v1 = vld [vmem:[#allocation11 + $0x20] sm:$0xff] }
 0x231   :  { %932 = vmatprep.subr.bf16.mxu0 %v1138_v0  ;;  %v936_v41 = vpack.c.bf16 %v503_v40, %v502_v1 }
 0x234   :  { %934 = vmatpush3.bf16.msra.mxu0 %v933_v39 }
 0x235   :  { %935 = vmatprep.subr.bf16.mxu0 %v1138_v0 }
 0x238   :  { %937 = vmatpush3.bf16.msra.mxu0 %v936_v41 }
 0x239   :  { %938 = vmatprep.subr.bf16.mxu0 %v1138_v0 }
 0x23c   :  { %940 = vmatpush3.bf16.msra.mxu0 %v939_v44 }
 0x23d   :  { %941 = vmatprep.subr.bf16.mxu0 %v1138_v0 }
 0x240   :  { %943 = vmatpush3.bf16.msra.mxu0 %v942_v47 }
 0x241   :  { %944 = vmatprep.subr.bf16.mxu0 %v1138_v0 }
 0x244   :  { %946 = vmatpush3.bf16.msra.mxu0 %v945_v50 }
 0x245   :  { %947 = vmatprep.subr.bf16.mxu0 %v1138_v0 }
 0x248   :  { %949 = vmatpush3.bf16.msra.mxu0 %v948_v59 }
 0x249   :  { %950 = vmatprep.subr.bf16.mxu0 %v1138_v0 }
 0x24c   :  { %952 = vmatpush3.bf16.msra.mxu0 %v951_v62 }
 0x302   :  { %v397_v52 = vpop.f32.mrb[2].mxu0 }
 0x303   :  { %v398_v53 = vadd.f32 %v614_v51, %v397_v52  ;;  %v776_v54 = vpop.f32.mrb[3].mxu0 }
 0x305   :  { %v401_v55 = vmul.f32 0.01, %v398_v53 }
 0x307   :  { %v402_v56 = vmax.f32 %v398_v53, %v401_v55 }
 0x309   :  { %810 = vmatmul.mubr.f32.vlgmr.msra.gmra.mrb[2].mxu1 %v402_v56 }
 0x3dc   :  { %v492_v2 = vpop.f32.mrb[2].mxu1 }
 0x3dd   :  { %v493_v3 = vadd.f32 %v615_v63, %v492_v2  ;;  %v811_v4 = vpop.f32.mrb[3].mxu1 }
 0x3df   :  { %v496_v5 = vmul.f32 0.01, %v493_v3 }
 0x3e1   :  { %v497_v6 = vmax.f32 %v493_v3, %v496_v5 }
 0x3e3   :  { %845 = vmatmul.mubr.f32.vlgmr.msra.gmra.mrb[4].mxu0 %v497_v6 }
 0x4b6   :  { %v587_v0 = vpop.f32.mrb[4].mxu0 }
 0x4b7   :  { %v588_v8 = vadd.f32 %v616_v7, %v587_v0  ;;  %v846_v9 = vpop.f32.mrb[5].mxu0 }
 0x4b9   :  { %591 = vst [vmem:[#allocation13] sm:$0xff] %v588_v8 }
 0x4ba   :  { %1109 = shalt.err (!%p1106_p10)
}
 0x4bb   :  { %s1110_s3 = scalar_lea.hbm %s1373_s11, 128 }
 0x4bc   :  { %p1111_p11 = scmp.ne.s32.totalorder %s1373_s11, %s1110_s3  ;;  %p1114_p12 = scmp.lt.u32.totalorder %s1110_s3, %s1373_s11 }
 0x4be   :  { %p1116_p13 = pnand %p1114_p12, %p1111_p11 }
 0x4c0   :  { %1119 = shalt.err (!%p1116_p13)
}
 0x4c1   :  { %601 = dma.vmem_to_hbm [thread:$0]  %s599_s13, 128, %s1373_s11, [#allocation4]  }
 0x4c2   :  { %1128 = dma.done.wait [#allocation4], 128  }
 0x4c3   :  { %1129 = vsyncadd [#allocation4], 4294967168 }
 0x4c4   :  { %605 = vsyncpa [#allocation3], 1 }
 0x4c5   :  { %606 = vsyncpa [#allocation6], 1 }
 0x4c6   :  { %607 = vsyncpa [#allocation9], 1 }
 0x4c7   :  { %608 = vsyncpa [#allocation12], 1 }
 0x4c8   :  { %609 = vsyncpa [#allocation4], 1 }

</bundles_post_ra>
